<compile_context>
chip_gen: v5e
topology: v5e:2x2
jax: 0.10.0
libtpu: 0.0.40
codegen_flags: <defaults>
</compile_context>

<pallas_src>
import functools

import jax
import jax.numpy as jnp
from jax.experimental import pallas as pl
from jax.experimental.pallas import tpu as pltpu


def _bce_dice_kernel(x_ref, t_ref, bce_ref, inter_ref, psq_ref, tsq_ref,
                     *, tile_hw, hw_valid, needs_mask):
    """Grid = (N, HW_pad // tile_hw).  Blocks seen by the kernel:
         x_ref/t_ref: (C, tile_hw) slice of sample n
         *_ref outputs: (C, 1) per-sample accumulators (resident across j)."""
    j = pl.program_id(1)

    @pl.when(j == 0)
    def _init():
        bce_ref[...] = jnp.zeros_like(bce_ref)
        inter_ref[...] = jnp.zeros_like(inter_ref)
        psq_ref[...] = jnp.zeros_like(psq_ref)
        tsq_ref[...] = jnp.zeros_like(tsq_ref)

    x = x_ref[...].astype(jnp.float32)   # (C, tile_hw) logits
    t = t_ref[...].astype(jnp.float32)   # (C, tile_hw) targets

    if needs_mask:
        lane = jax.lax.broadcasted_iota(jnp.int32, x.shape, dimension=1)
        valid = ((j * tile_hw + lane) < hw_valid).astype(jnp.float32)
        t = t * valid

    # One shared transcendental chain: exp + log1p + approx-reciprocal per element.
    e = jnp.exp(-jnp.abs(x))             # EUP
    log_term = jnp.log1p(e)              # EUP

    # Stable BCE-with-logits: max(x,0) - x*t + log1p(exp(-|x|))
    bce_elem = jnp.maximum(x, 0.0) - x * t + log_term
    if needs_mask:
        bce_elem = bce_elem * valid
    # Per-channel (lane-only) partial sum; scalar collapse deferred to the wrapper.
    bce_ref[...] += jnp.sum(bce_elem, axis=-1, keepdims=True)

    # sigmoid(x) from the shared exp: r = 1/(1+e) via approx recip + one Newton
    # refinement (VPU-only) to recover ~f32 accuracy.
    d = 1.0 + e
    r = pl.reciprocal(d, approx=True)
    r = r * (2.0 - d * r)
    p = jnp.where(x >= 0.0, r, e * r)
    if needs_mask:
        p = p * valid

    inter_ref[...] += jnp.sum(p * t, axis=-1, keepdims=True)
    psq_ref[...] += jnp.sum(p * p, axis=-1, keepdims=True)
    tsq_ref[...] += jnp.sum(t * t, axis=-1, keepdims=True)


def _choose_tile_hw(hw, c, itemsize=4, budget_bytes=4 << 20):
    """Largest multiple-of-128 lane tile such that the double-buffered input blocks
    (2 inputs x 2 buffers x C x tile x itemsize) stay within `budget_bytes`.
    4 MiB keeps us safely under the scoped-VMEM defaults of v5e/v6e/v7x."""
    max_tile = budget_bytes // (4 * c * itemsize)
    max_tile = max(128, (max_tile // 128) * 128)
    hw_up = ((hw + 127) // 128) * 128
    return min(hw_up, max_tile)


def bce_dice_loss(logits, target, alpha=1.0, beta=1.0, eps=1e-6, tile_hw=None):
    """logits/target: (N, C, H, W) arrays. Returns scalar f32 loss."""
    assert logits.shape == target.shape
    N, C, H, W = logits.shape
    HW = H * W

    if tile_hw is None:
        tile_hw = _choose_tile_hw(HW, C)
    hw_pad = ((HW + tile_hw - 1) // tile_hw) * tile_hw
    needs_mask = hw_pad != HW

    # Free, contiguous reshape -- no transposed HBM copy of either input.
    x3 = logits.reshape(N, C, HW)
    t3 = target.reshape(N, C, HW)
    if needs_mask:
        pad = ((0, 0), (0, 0), (0, hw_pad - HW))
        x3 = jnp.pad(x3, pad)
        t3 = jnp.pad(t3, pad)

    kernel = functools.partial(
        _bce_dice_kernel,
        tile_hw=tile_hw, hw_valid=HW, needs_mask=needs_mask,
    )

    part_shape = jax.ShapeDtypeStruct((N, C, 1), jnp.float32)
    part_spec = pl.BlockSpec((None, C, 1), lambda n, j: (n, 0, 0))
    in_spec = pl.BlockSpec((None, C, tile_hw), lambda n, j: (n, 0, j))

    bce_p, inter_p, psq_p, tsq_p = pl.pallas_call(
        kernel,
        out_shape=(part_shape, part_shape, part_shape, part_shape),
        grid_spec=pltpu.PrefetchScalarGridSpec(
            num_scalar_prefetch=0,
            grid=(N, hw_pad // tile_hw),
            in_specs=[in_spec, in_spec],
            out_specs=(part_spec, part_spec, part_spec, part_spec),
        ),
        compiler_params=pltpu.CompilerParams(
            dimension_semantics=("parallel", "arbitrary"),
            vmem_limit_bytes=32 * 1024 * 1024,
        ),
    )(x3, t3)

    # Tiny finalize in plain JAX over N*C partial sums.
    bce_mean = jnp.sum(bce_p) / (N * C * HW)
    intersect = jnp.sum(inter_p[..., 0], axis=0)                               # (C,)
    denom = jnp.sum(psq_p[..., 0], axis=0) + jnp.sum(tsq_p[..., 0], axis=0)    # (C,)
    per_channel_dice = 2.0 * intersect / jnp.maximum(denom, eps)
    dice_loss = 1.0 - jnp.mean(per_channel_dice)
    return alpha * bce_mean + beta * dice_loss


def _reference(logits, target, alpha, beta, eps=1e-6):
    """Pure-JAX reference mirroring the PyTorch module."""
    x = logits.astype(jnp.float32)
    t = target.astype(jnp.float32)
    bce = jnp.mean(jnp.maximum(x, 0.0) - x * t + jnp.log1p(jnp.exp(-jnp.abs(x))))
    C = x.shape[1]
    xf = jnp.transpose(x, (1, 0, 2, 3)).reshape(C, -1)
    tf = jnp.transpose(t, (1, 0, 2, 3)).reshape(C, -1)
    p = jax.nn.sigmoid(xf)
    intersect = jnp.sum(p * tf, axis=-1)
    denom = jnp.sum(p * p, axis=-1) + jnp.sum(tf * tf, axis=-1)
    dice = 2.0 * intersect / jnp.maximum(denom, eps)
    return alpha * bce + beta * (1.0 - jnp.mean(dice))


if __name__ == "__main__":
    # Deterministic module "parameters": BCEDiceLoss(alpha, beta)
    alpha, beta = 0.7, 0.3

    key = jax.random.PRNGKey(0)
    k1, k2, k3, k4 = jax.random.split(key, 4)

    # Case 1: H*W is a multiple of 128 (no padding path).
    N, C, H, W = 2, 4, 16, 16
    logits = jax.random.normal(k1, (N, C, H, W), dtype=jnp.float32)
    target = (jax.random.uniform(k2, (N, C, H, W)) > 0.5).astype(jnp.float32)
    loss = jax.block_until_ready(bce_dice_loss(logits, target, alpha=alpha, beta=beta))
    ref = _reference(logits, target, alpha, beta)
    assert jnp.allclose(loss, ref, rtol=1e-4, atol=1e-5), (loss, ref)

    # Case 2: ragged H*W (exercises the pad + in-kernel mask path).
    N2, C2, H2, W2 = 2, 4, 10, 10
    logits2 = jax.random.normal(k3, (N2, C2, H2, W2), dtype=jnp.float32)
    target2 = (jax.random.uniform(k4, (N2, C2, H2, W2)) > 0.5).astype(jnp.float32)
    loss2 = jax.block_until_ready(bce_dice_loss(logits2, target2, alpha=alpha, beta=beta))
    ref2 = _reference(logits2, target2, alpha, beta)
    assert jnp.allclose(loss2, ref2, rtol=1e-4, atol=1e-5), (loss2, ref2)

    print("KERNEL_OK")
</pallas_src>

<mosaic_0001>
module attributes {stable_mosaic.version = 11 : i64} {
  func.func @_bce_dice_kernel(%arg0: i32, %arg1: i32, %arg2: memref<1x4x256xf32, #tpu.memory_space<vmem>>, %arg3: memref<1x4x256xf32, #tpu.memory_space<vmem>>, %arg4: memref<1x4x1xf32, #tpu.memory_space<vmem>>, %arg5: memref<1x4x1xf32, #tpu.memory_space<vmem>>, %arg6: memref<1x4x1xf32, #tpu.memory_space<vmem>>, %arg7: memref<1x4x1xf32, #tpu.memory_space<vmem>>) attributes {dimension_semantics = [#tpu.dimension_semantics<parallel>, #tpu.dimension_semantics<arbitrary>], iteration_bounds = array<i64: 2, 1>, scalar_prefetch = 0 : i64, scratch_operands = 0 : i64, tpu.core_type = #tpu.core_type<tc>, window_params = [{transform_indices = @transform_0, window_bounds = array<i64: 1, 4, 256>}, {transform_indices = @transform_1, window_bounds = array<i64: 1, 4, 256>}, {transform_indices = @transform_2, window_bounds = array<i64: 1, 4, 1>}, {transform_indices = @transform_3, window_bounds = array<i64: 1, 4, 1>}, {transform_indices = @transform_4, window_bounds = array<i64: 1, 4, 1>}, {transform_indices = @transform_5, window_bounds = array<i64: 1, 4, 1>}]} {
    %c0_i32 = arith.constant 0 : i32
    %0 = arith.cmpi eq, %arg1, %c0_i32 : i32
    %1 = arith.extui %0 : i1 to i32
    %c0_i32_0 = arith.constant 0 : i32
    %2 = arith.cmpi ne, %1, %c0_i32_0 : i32
    scf.if %2 {
      %cst_38 = arith.constant 0.000000e+00 : f32
      %63 = vector.broadcast %cst_38 : f32 to vector<4x1xf32>
      %c0_39 = arith.constant 0 : index
      %c0_40 = arith.constant 0 : index
      %c0_41 = arith.constant 0 : index
      %64 = vector.load %arg4[%c0_39, %c0_40, %c0_41] : memref<1x4x1xf32, #tpu.memory_space<vmem>>, vector<1x4x1xf32>
      %65 = vector.shape_cast %64 : vector<1x4x1xf32> to vector<4x1xf32>
      %66 = vector.shape_cast %63 : vector<4x1xf32> to vector<1x4x1xf32>
      tpu.vector_store %arg4[%c0_39, %c0_40, %c0_41], %66 {strides = array<i32>} : memref<1x4x1xf32, #tpu.memory_space<vmem>>, vector<1x4x1xf32>,
      %cst_42 = arith.constant 0.000000e+00 : f32
      %67 = vector.broadcast %cst_42 : f32 to vector<4x1xf32>
      %c0_43 = arith.constant 0 : index
      %c0_44 = arith.constant 0 : index
      %c0_45 = arith.constant 0 : index
      %68 = vector.load %arg5[%c0_43, %c0_44, %c0_45] : memref<1x4x1xf32, #tpu.memory_space<vmem>>, vector<1x4x1xf32>
      %69 = vector.shape_cast %68 : vector<1x4x1xf32> to vector<4x1xf32>
      %70 = vector.shape_cast %67 : vector<4x1xf32> to vector<1x4x1xf32>
      tpu.vector_store %arg5[%c0_43, %c0_44, %c0_45], %70 {strides = array<i32>} : memref<1x4x1xf32, #tpu.memory_space<vmem>>, vector<1x4x1xf32>,
      %cst_46 = arith.constant 0.000000e+00 : f32
      %71 = vector.broadcast %cst_46 : f32 to vector<4x1xf32>
      %c0_47 = arith.constant 0 : index
      %c0_48 = arith.constant 0 : index
      %c0_49 = arith.constant 0 : index
      %72 = vector.load %arg6[%c0_47, %c0_48, %c0_49] : memref<1x4x1xf32, #tpu.memory_space<vmem>>, vector<1x4x1xf32>
      %73 = vector.shape_cast %72 : vector<1x4x1xf32> to vector<4x1xf32>
      %74 = vector.shape_cast %71 : vector<4x1xf32> to vector<1x4x1xf32>
      tpu.vector_store %arg6[%c0_47, %c0_48, %c0_49], %74 {strides = array<i32>} : memref<1x4x1xf32, #tpu.memory_space<vmem>>, vector<1x4x1xf32>,
      %cst_50 = arith.constant 0.000000e+00 : f32
      %75 = vector.broadcast %cst_50 : f32 to vector<4x1xf32>
      %c0_51 = arith.constant 0 : index
      %c0_52 = arith.constant 0 : index
      %c0_53 = arith.constant 0 : index
      %76 = vector.load %arg7[%c0_51, %c0_52, %c0_53] : memref<1x4x1xf32, #tpu.memory_space<vmem>>, vector<1x4x1xf32>
      %77 = vector.shape_cast %76 : vector<1x4x1xf32> to vector<4x1xf32>
      %78 = vector.shape_cast %75 : vector<4x1xf32> to vector<1x4x1xf32>
      tpu.vector_store %arg7[%c0_51, %c0_52, %c0_53], %78 {strides = array<i32>} : memref<1x4x1xf32, #tpu.memory_space<vmem>>, vector<1x4x1xf32>,
    } else {
    }
    %c0 = arith.constant 0 : index
    %c0_1 = arith.constant 0 : index
    %c0_2 = arith.constant 0 : index
    %3 = vector.load %arg2[%c0, %c0_1, %c0_2] : memref<1x4x256xf32, #tpu.memory_space<vmem>>, vector<1x4x256xf32>
    %4 = vector.shape_cast %3 : vector<1x4x256xf32> to vector<4x256xf32>
    %c0_3 = arith.constant 0 : index
    %c0_4 = arith.constant 0 : index
    %c0_5 = arith.constant 0 : index
    %5 = vector.load %arg3[%c0_3, %c0_4, %c0_5] : memref<1x4x256xf32, #tpu.memory_space<vmem>>, vector<1x4x256xf32>
    %6 = vector.shape_cast %5 : vector<1x4x256xf32> to vector<4x256xf32>
    %7 = math.absf %4 : vector<4x256xf32>
    %cst = arith.constant 0.000000e+00 : f32
    %8 = vector.broadcast %cst : f32 to vector<4x256xf32>
    %9 = arith.subf %8, %7 : vector<4x256xf32>
    %10 = math.exp %9 : vector<4x256xf32>
    %11 = math.log1p %10 : vector<4x256xf32>
    %cst_6 = arith.constant 0.000000e+00 : f32
    %12 = vector.broadcast %cst_6 : f32 to vector<4x256xf32>
    %13 = arith.maximumf %4, %12 : vector<4x256xf32>
    %14 = arith.mulf %4, %6 : vector<4x256xf32>
    %15 = arith.subf %13, %14 : vector<4x256xf32>
    %16 = arith.addf %15, %11 : vector<4x256xf32>
    %c0_7 = arith.constant 0 : index
    %c0_8 = arith.constant 0 : index
    %c0_9 = arith.constant 0 : index
    %17 = vector.load %arg4[%c0_7, %c0_8, %c0_9] : memref<1x4x1xf32, #tpu.memory_space<vmem>>, vector<1x4x1xf32>
    %18 = vector.shape_cast %17 : vector<1x4x1xf32> to vector<4x1xf32>
    %cst_10 = arith.constant dense<0.000000e+00> : vector<4xf32>
    %19 = vector.multi_reduction <add>, %16, %cst_10 [1] : vector<4x256xf32> to vector<4xf32>
    %20 = vector.shape_cast %19 : vector<4xf32> to vector<4x1xf32>
    %21 = arith.addf %18, %20 : vector<4x1xf32>
    %c0_11 = arith.constant 0 : index
    %c0_12 = arith.constant 0 : index
    %c0_13 = arith.constant 0 : index
    %22 = vector.load %arg4[%c0_11, %c0_12, %c0_13] : memref<1x4x1xf32, #tpu.memory_space<vmem>>, vector<1x4x1xf32>
    %23 = vector.shape_cast %22 : vector<1x4x1xf32> to vector<4x1xf32>
    %24 = vector.shape_cast %21 : vector<4x1xf32> to vector<1x4x1xf32>
    tpu.vector_store %arg4[%c0_11, %c0_12, %c0_13], %24 {strides = array<i32>} : memref<1x4x1xf32, #tpu.memory_space<vmem>>, vector<1x4x1xf32>,
    %cst_14 = arith.constant 1.000000e+00 : f32
    %25 = vector.broadcast %cst_14 : f32 to vector<4x256xf32>
    %26 = arith.addf %25, %10 : vector<4x256xf32>
    %27 = tpu.reciprocal %26 {approx = true} : vector<4x256xf32> -> vector<4x256xf32>
    %28 = arith.mulf %26, %27 : vector<4x256xf32>
    %cst_15 = arith.constant 2.000000e+00 : f32
    %29 = vector.broadcast %cst_15 : f32 to vector<4x256xf32>
    %30 = arith.subf %29, %28 : vector<4x256xf32>
    %31 = arith.mulf %27, %30 : vector<4x256xf32>
    %cst_16 = arith.constant 0.000000e+00 : f32
    %32 = vector.broadcast %cst_16 : f32 to vector<4x256xf32>
    %33 = arith.cmpf oge, %4, %32 : vector<4x256xf32>
    %34 = arith.mulf %10, %31 : vector<4x256xf32>
    %35 = arith.select %33, %31, %34 : vector<4x256xi1>, vector<4x256xf32>
    %c0_17 = arith.constant 0 : index
    %c0_18 = arith.constant 0 : index
    %c0_19 = arith.constant 0 : index
    %36 = vector.load %arg5[%c0_17, %c0_18, %c0_19] : memref<1x4x1xf32, #tpu.memory_space<vmem>>, vector<1x4x1xf32>
    %37 = vector.shape_cast %36 : vector<1x4x1xf32> to vector<4x1xf32>
    %38 = arith.mulf %35, %6 : vector<4x256xf32>
    %cst_20 = arith.constant dense<0.000000e+00> : vector<4xf32>
    %39 = vector.multi_reduction <add>, %38, %cst_20 [1] : vector<4x256xf32> to vector<4xf32>
    %40 = vector.shape_cast %39 : vector<4xf32> to vector<4x1xf32>
    %41 = arith.addf %37, %40 : vector<4x1xf32>
    %c0_21 = arith.constant 0 : index
    %c0_22 = arith.constant 0 : index
    %c0_23 = arith.constant 0 : index
    %42 = vector.load %arg5[%c0_21, %c0_22, %c0_23] : memref<1x4x1xf32, #tpu.memory_space<vmem>>, vector<1x4x1xf32>
    %43 = vector.shape_cast %42 : vector<1x4x1xf32> to vector<4x1xf32>
    %44 = vector.shape_cast %41 : vector<4x1xf32> to vector<1x4x1xf32>
    tpu.vector_store %arg5[%c0_21, %c0_22, %c0_23], %44 {strides = array<i32>} : memref<1x4x1xf32, #tpu.memory_space<vmem>>, vector<1x4x1xf32>,
    %c0_24 = arith.constant 0 : index
    %c0_25 = arith.constant 0 : index
    %c0_26 = arith.constant 0 : index
    %45 = vector.load %arg6[%c0_24, %c0_25, %c0_26] : memref<1x4x1xf32, #tpu.memory_space<vmem>>, vector<1x4x1xf32>
    %46 = vector.shape_cast %45 : vector<1x4x1xf32> to vector<4x1xf32>
    %47 = arith.mulf %35, %35 : vector<4x256xf32>
    %cst_27 = arith.constant dense<0.000000e+00> : vector<4xf32>
    %48 = vector.multi_reduction <add>, %47, %cst_27 [1] : vector<4x256xf32> to vector<4xf32>
    %49 = vector.shape_cast %48 : vector<4xf32> to vector<4x1xf32>
    %50 = arith.addf %46, %49 : vector<4x1xf32>
    %c0_28 = arith.constant 0 : index
    %c0_29 = arith.constant 0 : index
    %c0_30 = arith.constant 0 : index
    %51 = vector.load %arg6[%c0_28, %c0_29, %c0_30] : memref<1x4x1xf32, #tpu.memory_space<vmem>>, vector<1x4x1xf32>
    %52 = vector.shape_cast %51 : vector<1x4x1xf32> to vector<4x1xf32>
    %53 = vector.shape_cast %50 : vector<4x1xf32> to vector<1x4x1xf32>
    tpu.vector_store %arg6[%c0_28, %c0_29, %c0_30], %53 {strides = array<i32>} : memref<1x4x1xf32, #tpu.memory_space<vmem>>, vector<1x4x1xf32>,
    %c0_31 = arith.constant 0 : index
    %c0_32 = arith.constant 0 : index
    %c0_33 = arith.constant 0 : index
    %54 = vector.load %arg7[%c0_31, %c0_32, %c0_33] : memref<1x4x1xf32, #tpu.memory_space<vmem>>, vector<1x4x1xf32>
    %55 = vector.shape_cast %54 : vector<1x4x1xf32> to vector<4x1xf32>
    %56 = arith.mulf %6, %6 : vector<4x256xf32>
    %cst_34 = arith.constant dense<0.000000e+00> : vector<4xf32>
    %57 = vector.multi_reduction <add>, %56, %cst_34 [1] : vector<4x256xf32> to vector<4xf32>
    %58 = vector.shape_cast %57 : vector<4xf32> to vector<4x1xf32>
    %59 = arith.addf %55, %58 : vector<4x1xf32>
    %c0_35 = arith.constant 0 : index
    %c0_36 = arith.constant 0 : index
    %c0_37 = arith.constant 0 : index
    %60 = vector.load %arg7[%c0_35, %c0_36, %c0_37] : memref<1x4x1xf32, #tpu.memory_space<vmem>>, vector<1x4x1xf32>
    %61 = vector.shape_cast %60 : vector<1x4x1xf32> to vector<4x1xf32>
    %62 = vector.shape_cast %59 : vector<4x1xf32> to vector<1x4x1xf32>
    tpu.vector_store %arg7[%c0_35, %c0_36, %c0_37], %62 {strides = array<i32>} : memref<1x4x1xf32, #tpu.memory_space<vmem>>, vector<1x4x1xf32>,
    return
  }
  func.func @transform_0(%arg0: i32, %arg1: i32) -> (i32, i32, i32) {
    %c0_i32 = arith.constant 0 : i32
    %c0_i32_0 = arith.constant 0 : i32
    return %arg0, %c0_i32, %arg1 : i32, i32, i32
  }
  func.func @transform_1(%arg0: i32, %arg1: i32) -> (i32, i32, i32) {
    %c0_i32 = arith.constant 0 : i32
    %c0_i32_0 = arith.constant 0 : i32
    return %arg0, %c0_i32, %arg1 : i32, i32, i32
  }
  func.func @transform_2(%arg0: i32, %arg1: i32) -> (i32, i32, i32) {
    %c0_i32 = arith.constant 0 : i32
    %c0_i32_0 = arith.constant 0 : i32
    %c0_i32_1 = arith.constant 0 : i32
    return %arg0, %c0_i32, %c0_i32_0 : i32, i32, i32
  }
  func.func @transform_3(%arg0: i32, %arg1: i32) -> (i32, i32, i32) {
    %c0_i32 = arith.constant 0 : i32
    %c0_i32_0 = arith.constant 0 : i32
    %c0_i32_1 = arith.constant 0 : i32
    return %arg0, %c0_i32, %c0_i32_0 : i32, i32, i32
  }
  func.func @transform_4(%arg0: i32, %arg1: i32) -> (i32, i32, i32) {
    %c0_i32 = arith.constant 0 : i32
    %c0_i32_0 = arith.constant 0 : i32
    %c0_i32_1 = arith.constant 0 : i32
    return %arg0, %c0_i32, %c0_i32_0 : i32, i32, i32
  }
  func.func @transform_5(%arg0: i32, %arg1: i32) -> (i32, i32, i32) {
    %c0_i32 = arith.constant 0 : i32
    %c0_i32_0 = arith.constant 0 : i32
    %c0_i32_1 = arith.constant 0 : i32
    return %arg0, %c0_i32, %c0_i32_0 : i32, i32, i32
  }
}

</mosaic_0001>

<bundles_post_ra>
// kernel: tpu_custom_call.1
= control target key start
LH: loop header
LB: loop body
LE: loop exit
PB: predicated region body
PF: predicated region fallthrough
CT: control target
= control target key end

     0   :  { %11 = vsyncpa [#allocation3], 0  ;;  %s998_s0 = inlined_call_operand.hbm [shape: f32[2,4,256], index: 0, kind: input, shape index: {}]   ;;  %s999_s1 = inlined_call_operand.hbm [shape: f32[2,4,256], index: 1, kind: input, shape index: {}]   ;;  %s1000_s2 = inlined_call_operand.vmem [shape: f32[2,4,1], index: 2, kind: output, shape index: {0}]   ;;  %s1001_s3 = inlined_call_operand.vmem [shape: f32[2,4,1], index: 3, kind: output, shape index: {1}]   ;;  %s1002_s4 = inlined_call_operand.vmem [shape: f32[2,4,1], index: 4, kind: output, shape index: {2}]   ;;  %s1003_s5 = inlined_call_operand.vmem [shape: f32[2,4,1], index: 5, kind: output, shape index: {3}]  }
   0x1   :  { %13 = vsyncpa [#allocation3 + $0x1], 0 }
   0x2   :  { %14 = vsyncpa [#allocation5], 0 }
   0x3   :  { %16 = vsyncpa [#allocation5 + $0x1], 0  ;;  %s863_s18 = smov 0   ;;  %s865_s19 = smov 0  }
   0x4   :  { %s867_s20 = smov 0   ;;  %s869_s21 = smov 0  }
   0x5   :  { %s871_s22 = smov 0   ;;  %s873_s23 = smov 0  }
   0x6 LB: > { %s628_s24 = sadd.s32 4294967295, %s830_s23   ;;  %s34_s25 = sadd.s32 1, %s826_s22  ;;  %s830_s23 = sphi %s873_s23, %s22_s23   ;;  %s826_s22 = sphi %s871_s22, %s1010_s22   ;;  %s822_s21 = sphi %s869_s21, %s1009_s21   ;;  %s818_s20 = sphi %s867_s20, %s1008_s20   ;;  %s814_s19 = sphi %s865_s19, %s1007_s19   ;;  %s810_s18 = sphi %s863_s18, %s1006_s18  }
   0x7   : > { %p36_p0 = scmp.ge.s32.totalorder %s34_s25, 2  ;;  %s43_s26 = sadd.s32 1, %s818_s20 }
   0x8   : > { %p50_p1 = scmp.ne.s32.totalorder %s818_s20, %s814_s19  ;;  %p51_p2 = scmp.eq.s32.totalorder %s830_s23, 0 }
   0x9   : > { %s1012_s25 = smov (%p36_p0, %s34_s25), 0  ;;  %p56_p4 = scmp.ne.s32.totalorder %s814_s19, %s810_s18 }
   0xa   : > { %p899_p3 = por %p51_p2, %p50_p1  ;;  %s38_s28 = ssub.s32 %s826_s22, %s1012_s25 }
   0xb   : > { %p57_p5 = scmp.eq.s32.totalorder %s628_s24, 0  ;;  %p41_p6 = scmp.eq.s32.totalorder %s38_s28, 0 }
   0xc   : > { %p660_p8 = scmp.lt.s32.totalorder %s830_s23, 2  ;;  %s212_s6 = sand.u32 1, %s818_s20  }
   0xd   : > { %p906_p7 = por %p57_p5, %p56_p4  ;;  %s647_s7 = sshll.u32 %s826_s22, 3 }
   0xe   : > { %s912_s30 = scalar_select %p41_p6, %s818_s20, %s43_s26  }
   0xf   : > { %s632_s8 = sshll.u32 %s212_s6, 3  ;;  %s223_s11 = scalar_lea.hbm %s998_s0, %s647_s7 }
  0x10   : > { %s225_s12 = sshll.u32 %s223_s11, 4  ;;  %s216_s13 = scalar_lea.vmem [#allocation2], %s632_s8  ;;  %s226_s12 = int_to_ptr.hbm [resolvable:$true] %s225_s12 }
  0x11   : > { %s227_s14 = sshll.u32 %s216_s13, 4  ;;  %p654_p9 = pnand %p660_p8, %p899_p3  ;;  %s228_s14 = int_to_ptr.vmem [resolvable:$true] %s227_s14 }
  0x12   : > { %p638_p10 = scmp.ge.s32.totalorder %s830_s23, 1  ;;  %p254_p11 = scmp.lt.s32.totalorder %s830_s23, 3 }
  0x13   : > { %s213_s15 = scalar_lea.sflag [#allocation3], %s212_s6  ;;  %s245_s18 = scalar_lea.hbm %s999_s1, %s647_s7 }
  0x14   : > { %656 = dma.hbm_to_vmem [thread:$0]  (!%p654_p9), %s226_s12, 128, %s228_s14, %s213_s15  }
  0x15   : > { %p255_p12 = pnand %p638_p10, %p254_p11  ;;  %s247_s24 = sshll.u32 %s245_s18, 4  ;;  %s248_s24 = int_to_ptr.hbm [resolvable:$true] %s247_s24 }
  0x16   : > { %s238_s26 = scalar_lea.vmem [#allocation4], %s632_s8  ;;  %s235_s9 = scalar_lea.sflag [#allocation5], %s212_s6 }
  0x17   : > { %s249_s28 = sshll.u32 %s238_s26, 4  ;;  %258 = sbr.rel (%p255_p12) target bundleno = 213 (0xd5), region = 28  ;;  %s250_s28 = int_to_ptr.vmem [resolvable:$true] %s249_s28 }
  0x18   : > { %659 = dma.hbm_to_vmem [thread:$0]  (!%p654_p9), %s248_s24, 128, %s250_s28, %s235_s9  }
  0x19   : > { %s260_s27 = sand.u32 (!%p255_p12), 1, %s814_s19  }
  0x1a   : > { %s639_s10 = sshll.u32 (!%p255_p12), %s260_s27, 3  ;;  %s261_s11 = scalar_lea.sflag (!%p255_p12), [#allocation3], %s260_s27 }
  0x1b   : > { %s264_s13 = scalar_lea.vmem (!%p255_p12), [#allocation2], %s639_s10 }
  0x1c   : > { %801 = dma.done.wait (%p906_p7), %s261_s11, 128  }
  0x1d   : > { %803 = vsyncadd (%p906_p7), %s261_s11, 4294967168  ;;  %s271_s7 = scalar_lea.sflag [#allocation5], %s260_s27  ;;  %s274_s8 = scalar_lea.vmem [#allocation4], %s639_s10 }
  0x1e   : > { %805 = dma.done.wait (%p906_p7), %s271_s7, 128  }
  0x1f   : > { %807 = vsyncadd (%p906_p7), %s271_s7, 4294967168  ;;  %v345_v0 = vld [vmem:[%s264_s13] sm:$0xff]  ;;  %v346_v7 = vld [vmem:[%s274_s8] sm:$0xff]  ;;  %p320_p13 = scmp.lt.s32.totalorder %s822_s21, 1  ;;  %vm340_vm2 = vcmask 3072   ;;  %v832_v24 = vmov 0.0  }
  0x20   : > { %v347_v1 = vand.u32 2147483647, %v345_v0  ;;  %v360_v10 = vmax.f32 %v345_v0, 0.0  ;;  %v361_v11 = vmul.f32 %v346_v7, %v345_v0  ;;  %vm385_vm1 = vcmp.ge.f32.partialorder %v345_v0, 0.0 }
  0x21   : > { %s1014_s21 = smov (!%p320_p13, %s822_s21), 1  ;;  %vm371_vm3 = vcmask 1043456   ;;  %v419_v37 = vmul.f32 %v346_v7, %v346_v7 }
  0x22   : > { %v348_v2 = vsub.f32 0.0, %v347_v1  ;;  %v362_v14 = vsub.f32 %v360_v10, %v361_v11  ;;  %s641_s29 = sshll.u32 %s1014_s21, 2 }
  0x23   : > { %s940_s14 = scalar_lea.vmem %s1002_s4, %s641_s29  ;;  %s947_s21 = scalar_lea.vmem %s1000_s2, %s641_s29 }
  0x24   : > { %v349_v3 = vmul.f32 1.442695, %v348_v2  ;;  %343 = vst.msk [vmem:[%s940_s14] sm:$0xf] %vm340_vm2, %v832_v24  ;;  %s956_s24 = scalar_lea.vmem %s1003_s5, %s641_s29  ;;  %s327_s9 = scalar_lea.vmem %s1001_s3, %s641_s29 }
  0x25   : > { %341 = vst.msk [vmem:[%s947_s21] sm:$0xf] %vm340_vm2, %v832_v24 }
  0x26   : > { %710 = vpow2.f32 %v349_v3  ;;  %344 = vst.msk [vmem:[%s956_s24] sm:$0xf] %vm340_vm2, %v832_v24 }
  0x27   : > { %342 = vst.msk [vmem:[%s327_s9] sm:$0xf] %vm340_vm2, %v832_v24 }
  0x2b   : > { %v403_v54 = vld [vmem:[%s940_s14] sm:$0xf] }
  0x2c   : > { %v711_v4 = vpop.eup %710  ;;  %v364_v48 = vld [vmem:[%s947_s21] sm:$0xf] }
  0x2d   : > { %v351_v5 = vadd.f32 1.0, %v711_v4  ;;  %v354_v6 = vmul.f32 -0.5, %v711_v4  ;;  %v357_v9 = vand.u32 2147483647, %v711_v4  ;;  %v418_v57 = vld [vmem:[%s956_s24] sm:$0xf] }
  0x2e   : > { %v388_v51 = vld [vmem:[%s327_s9] sm:$0xf] }
  0x2f   : > { %712 = vlog2.f32 %v351_v5  ;;  %v355_v8 = vadd.f32 1.0, %v354_v6  ;;  %vm358_vm0 = vcmp.lt.f32.partialorder %v357_v9, 0.0004427343 }
  0x30   : > { %714 = vrcp.f32 %v351_v5 }
  0x31   : > { %v356_v12 = vmul.f32 %v711_v4, %v355_v8 }
  0x35   : > { %v713_v13 = vpop.eup %712 }
  0x36   : > { %v715_v15 = vpop.eup %714  ;;  %v353_v16 = vmul.f32 0.6931472, %v713_v13 }
  0x37   : > { %v382_v17 = vmul.f32 %v715_v15, %v351_v5 }
  0x38   : > { %v359_v18 = vsel %vm358_vm0, %v356_v12, %v353_v16 }
  0x39   : > { %v363_v19 = vadd.f32 %v362_v14, %v359_v18  ;;  %v383_v20 = vsub.f32 2.0, %v382_v17 }
  0x3b   : > { %366 = vst [vmem:[#allocation1] ss:$2 sm:$0xff] %v363_v19  ;;  %v384_v21 = vmul.f32 %v715_v15, %v383_v20 }
  0x3d   : > { %v386_v22 = vmul.f32 %v711_v4, %v384_v21 }
  0x3f   : > { %v387_v23 = vsel %vm385_vm1, %v384_v21, %v386_v22 }
  0x40   : > { %v389_v25 = vmul.f32 %v387_v23, %v346_v7  ;;  %v404_v31 = vmul.f32 %v387_v23, %v387_v23 }
  0x42   : > { %v367_v26 = vld.sshfl [vmem:[#allocation1] sm:$0xff pattern:$0x75316420]  ;;  %v368_v27 = vld.sshfl [vmem:[#allocation1 + $0x8] sm:$0xff pattern:$0x75316420] }
  0x43   : > { %391 = vst [vmem:[#allocation1] ss:$2 sm:$0xff] %v389_v25  ;;  %v372_v28 = vsel %vm371_vm3, %v367_v26, 0.0  ;;  %v373_v29 = vsel %vm371_vm3, %v368_v27, 0.0 }
  0x44   : > { %v374_v30 = vadd.f32 %v373_v29, %v372_v28 }
  0x46   : > { %375 = vadd.xlane.f32.xlu0 %v374_v30 }
  0x4a   : > { %v392_v32 = vld.sshfl [vmem:[#allocation1] sm:$0xff pattern:$0x75316420]  ;;  %v393_v33 = vld.sshfl [vmem:[#allocation1 + $0x8] sm:$0xff pattern:$0x75316420] }
  0x4b   : > { %406 = vst [vmem:[#allocation1] ss:$2 sm:$0xff] %v404_v31  ;;  %v396_v34 = vsel %vm371_vm3, %v392_v32, 0.0  ;;  %v397_v35 = vsel %vm371_vm3, %v393_v33, 0.0 }
  0x4c   : > { %v398_v36 = vadd.f32 %v397_v35, %v396_v34 }
  0x4e   : > { %399 = vadd.xlane.f32.xlu0 %v398_v36 }
  0x52   : > { %v407_v38 = vld.sshfl [vmem:[#allocation1] sm:$0xff pattern:$0x75316420]  ;;  %v408_v39 = vld.sshfl [vmem:[#allocation1 + $0x8] sm:$0xff pattern:$0x75316420] }
  0x53   : > { %v411_v40 = vsel %vm371_vm3, %v407_v38, 0.0  ;;  %v412_v41 = vsel %vm371_vm3, %v408_v39, 0.0  ;;  %421 = vst [vmem:[#allocation1] ss:$2 sm:$0xff] %v419_v37 }
  0x54   : > { %v413_v42 = vadd.f32 %v412_v41, %v411_v40 }
  0x56   : > { %414 = vadd.xlane.f32.xlu1 %v413_v42 }
  0x5a   : > { %v422_v43 = vld.sshfl [vmem:[#allocation1] sm:$0xff pattern:$0x75316420]  ;;  %v423_v44 = vld.sshfl [vmem:[#allocation1 + $0x8] sm:$0xff pattern:$0x75316420] }
  0x5b   : > { %v426_v45 = vsel %vm371_vm3, %v422_v43, 0.0  ;;  %v427_v46 = vsel %vm371_vm3, %v423_v44, 0.0 }
  0x5c   : > { %v428_v47 = vadd.f32 %v427_v46, %v426_v45 }
  0x5e   : > { %429 = vadd.xlane.f32.xlu1 %v428_v47 }
  0xb9   : > { %v376_v49 = vpop.xlane.xlu0 %375 }
  0xba   : > { %v377_v50 = vadd.f32 %v376_v49, %v364_v48 }
  0xbc   : > { %379 = vst.msk [vmem:[%s947_s21] sm:$0xf] %vm340_vm2, %v377_v50 }
  0xc1   : > { %v400_v52 = vpop.xlane.xlu0 %399 }
  0xc2   : > { %v401_v53 = vadd.f32 %v400_v52, %v388_v51 }
  0xc4   : > { %402 = vst.msk [vmem:[%s327_s9] sm:$0xf] %vm340_vm2, %v401_v53 }
  0xc9   : > { %v415_v55 = vpop.xlane.xlu1 %414 }
  0xca   : > { %v416_v56 = vadd.f32 %v415_v55, %v403_v54 }
  0xcc   : > { %417 = vst.msk [vmem:[%s940_s14] sm:$0xf] %vm340_vm2, %v416_v56 }
  0xd1   : > { %v430_v58 = vpop.xlane.xlu1 %429 }
  0xd2   : > { %v431_v59 = vadd.f32 %v430_v58, %v418_v57 }
  0xd4   : > { %432 = vst.msk [vmem:[%s956_s24] sm:$0xf] %vm340_vm2, %v431_v59 }
  0xd5 PF: > { %s22_s23 = sadd.s32 1, %s830_s23   ;;  %s1006_s18 = smov %s814_s19 }
  0xd6   : > { %p19_p0 = scmp.ge.s32.totalorder %s22_s23, 4   ;;  %s1007_s19 = smov %s818_s20 }
  0xd7   : > { %s1008_s20 = smov %s912_s30  ;;  %s1009_s21 = smov %s826_s22 }
  0xd8   : > { %s1010_s22 = smov %s1012_s25  ;;  %21 = sbr.rel (!%p19_p0) target bundleno = 6 (0x6), region = 121 }
  0xdd   :  { %494 = vsyncpa [#allocation3], 1 }
  0xde   :  { %496 = vsyncpa [#allocation3 + $0x1], 1 }
  0xdf   :  { %497 = vsyncpa [#allocation5], 1 }
  0xe0   :  { %499 = vsyncpa [#allocation5 + $0x1], 1 }

</bundles_post_ra>
